<compile_context>
chip_gen: v7x
topology: tpu7x:2x2x1
jax: 0.10.0
libtpu: 0.0.40
codegen_flags: <defaults>
</compile_context>

<pallas_src>
import jax
import jax.numpy as jnp
from jax.experimental import pallas as pl
from jax.experimental.pallas import tpu as pltpu


def _round_up(n, m):
    return ((n + m - 1) // m) * m


def _round_down(n, m):
    return (n // m) * m


def _cdiv(a, b):
    return (a + b - 1) // b


def _choose_tiles(batch, dim, budget_bytes):
    """Pick (tile_b, tile_d) so one f32 x block is ~budget_bytes.

    Invariants (Mosaic block rules + lane-dense output stores):
      * if the batch needs >1 tile, tile_b is a multiple of 128;
        otherwise tile_b == round_up(batch, 8) (block == full padded batch).
      * tile_d == dim, or a multiple of 128 (wide-feature fallback).
    """
    bpe = 4  # f32 bytes per element
    b_single = _round_up(batch, 8)
    # Case 1: whole batch + full feature rows fit in one block.
    if b_single * dim * bpe <= budget_bytes:
        return b_single, dim
    # Case 2: batch-tiled, full feature rows per block.
    rows = _round_down(budget_bytes // (bpe * dim), 128)
    if rows >= 128:
        return rows, dim
    # Case 3: wide features — even 128 full rows blow the budget; tile D as well.
    tile_b = b_single if b_single <= 128 else 128
    tile_d = max(128, _round_down(budget_bytes // (bpe * tile_b), 128))
    tile_d = min(tile_d, _round_up(dim, 128))
    return tile_b, tile_d


def _make_kernel(tile_d, dim):
    mask_last_d = dim % tile_d != 0  # only possible in the D-split fallback

    def kernel(x_ref, w_ref, b_ref, o_ref, acc_ref):
        # x_ref: [TB, TD] VMEM, w_ref: [1, TD] VMEM (resident), b_ref: [1] SMEM,
        # o_ref: [1, TB] VMEM (lane-dense), acc_ref: [1, TB] f32 VMEM scratch.
        d = pl.program_id(1)

        @pl.when(d == 0)
        def _init():
            acc_ref[...] = jnp.zeros_like(acc_ref)

        x = x_ref[...].astype(jnp.float32)
        w = w_ref[...].astype(jnp.float32)          # broadcasts over the batch tile
        xw = x * w                                  # VPU multiply
        if mask_last_d:
            # Zero the out-of-range feature columns of the partial last D block so
            # garbage never reaches the accumulator (garbage * garbage could be NaN).
            col = jax.lax.broadcasted_iota(jnp.int32, xw.shape, 1) + d * tile_d
            xw = jnp.where(col < dim, xw, 0.0)
        acc_ref[...] += jnp.sum(xw, axis=-1)[None, :]   # lane reduce -> [1, TB]

        @pl.when(d == pl.num_programs(1) - 1)
        def _finalize():
            y = jax.nn.sigmoid(acc_ref[...] + b_ref[0])  # scalar bias from SMEM
            o_ref[...] = y.astype(o_ref.dtype)

    return kernel


def perceptron_forward(x, w, b, *, vmem_tile_budget_bytes=4 << 20):
    """sigmoid(x @ w + b) for a single-output linear layer.

    x: [B, D] float32; w: any D-element vector (e.g. [D, 1]); b: scalar / [1] / [1, 1].
    Returns [B, 1], matching PyTorch nn.Linear(D, 1) + nn.Sigmoid.

    vmem_tile_budget_bytes: target bytes per x block. The 4 MiB default keeps the two
    double-buffered tiles far below every generation's default scoped VMEM limit
    (v5e: 16 MiB); raise it (together with CompilerParams(vmem_limit_bytes=...)) for
    extra headroom on v7x's 3.2 TB/s HBM if desired.
    """
    B, D = x.shape
    w_row = jnp.asarray(w, jnp.float32).reshape(1, D)
    b_s = jnp.asarray(b, jnp.float32).reshape(1)

    tile_b, tile_d = _choose_tiles(B, D, vmem_tile_budget_bytes)
    n_b = _cdiv(B, tile_b)
    n_d = _cdiv(D, tile_d)
    b_out = n_b * tile_b   # rounded-up output keeps the (1, tile_b) stores unmasked

    kernel = _make_kernel(tile_d, D)
    cost = pl.CostEstimate(
        flops=2 * B * D,                      # multiply-add per element
        transcendentals=B,                    # one sigmoid per row
        bytes_accessed=4 * (B * D + D + B + 1),
    )

    out = pl.pallas_call(
        kernel,
        out_shape=jax.ShapeDtypeStruct((1, b_out), x.dtype),
        grid_spec=pltpu.PrefetchScalarGridSpec(
            num_scalar_prefetch=0,
            grid=(n_b, n_d),                                           # reduction (D) axis last
            in_specs=[
                pl.BlockSpec((tile_b, tile_d), lambda i, d: (i, d)),   # batch/feature-tiled x
                pl.BlockSpec((1, tile_d), lambda i, d: (0, d)),        # weight row
                pl.BlockSpec(memory_space=pltpu.MemorySpace.SMEM),     # scalar bias in SMEM
            ],
            out_specs=pl.BlockSpec((1, tile_b), lambda i, d: (0, i)),  # lane-dense output
            scratch_shapes=[pltpu.VMEM((1, tile_b), jnp.float32)],     # partial-sum accumulator
        ),
        compiler_params=pltpu.CompilerParams(
            dimension_semantics=("parallel", "arbitrary"),  # batch tiles across TCs (megacore)
        ),
        cost_estimate=cost,
    )(x, w_row, b_s)
    # Lanes >= B hold values computed from the partial last block's garbage rows; slicing
    # them off here is the only place they are ever observed (no NaN-sensitive reduction).
    return out[0, :B].reshape(B, 1)


if __name__ == "__main__":
    key = jax.random.PRNGKey(0)
    kx, kw, kb, k2 = jax.random.split(key, 4)

    def ref_forward(x, w, b):
        return jax.nn.sigmoid(
            jnp.dot(x, jnp.asarray(w, jnp.float32).reshape(-1, 1),
                    precision=jax.lax.Precision.HIGHEST)
            + jnp.asarray(b, jnp.float32).reshape(1, 1))

    # 1) Small shapes consistent with the module: batch=8, input_size=32.
    #    NOTE: at this toy size pallas_call overhead dominates; the kernel targets the
    #    B*D-in-the-MBs regime.
    batch, input_size = 8, 32
    bound = 1.0 / (input_size ** 0.5)   # nn.Linear default init range
    w = jax.random.uniform(kw, (input_size, 1), jnp.float32, -bound, bound)
    b = jax.random.uniform(kb, (1, 1), jnp.float32, -bound, bound)
    x = jax.random.normal(kx, (batch, input_size), jnp.float32)
    out = jax.block_until_ready(perceptron_forward(x, w, b))
    assert out.shape == (batch, 1)
    assert jnp.allclose(out, ref_forward(x, w, b), atol=1e-6, rtol=1e-6)

    # 2) Ragged batch in a single large tile (partial B block, no padding pass over x).
    k2a, k2b, k2c, k3 = jax.random.split(k2, 4)
    B2, D2 = 1037, 256
    bnd2 = 1.0 / (D2 ** 0.5)
    w2 = jax.random.uniform(k2a, (D2, 1), jnp.float32, -bnd2, bnd2)
    b2 = jax.random.uniform(k2b, (1, 1), jnp.float32, -bnd2, bnd2)
    x2 = jax.random.normal(k2c, (B2, D2), jnp.float32)
    out2 = jax.block_until_ready(perceptron_forward(x2, w2, b2))
    assert out2.shape == (B2, 1)
    assert jnp.allclose(out2, ref_forward(x2, w2, b2), atol=1e-5, rtol=1e-5)

    # 3) Forced small budget -> multi-tile batch grid ("parallel" axis, ragged last tile).
    k3a, k3b, k3c, k4 = jax.random.split(k3, 4)
    B3, D3 = 1000, 128
    bnd3 = 1.0 / (D3 ** 0.5)
    w3 = jax.random.uniform(k3a, (D3, 1), jnp.float32, -bnd3, bnd3)
    b3 = jax.random.uniform(k3b, (1, 1), jnp.float32, -bnd3, bnd3)
    x3 = jax.random.normal(k3c, (B3, D3), jnp.float32)
    out3 = jax.block_until_ready(
        perceptron_forward(x3, w3, b3, vmem_tile_budget_bytes=64 * 1024))
    assert out3.shape == (B3, 1)
    assert jnp.allclose(out3, ref_forward(x3, w3, b3), atol=1e-5, rtol=1e-5)

    # 4) Forced tiny budget -> wide-feature fallback (D grid axis, accumulator, masked tail).
    k4a, k4b, k4c = jax.random.split(k4, 3)
    B4, D4 = 37, 500
    bnd4 = 1.0 / (D4 ** 0.5)
    w4 = jax.random.uniform(k4a, (D4, 1), jnp.float32, -bnd4, bnd4)
    b4 = jax.random.uniform(k4b, (1, 1), jnp.float32, -bnd4, bnd4)
    x4 = jax.random.normal(k4c, (B4, D4), jnp.float32)
    out4 = jax.block_until_ready(
        perceptron_forward(x4, w4, b4, vmem_tile_budget_bytes=8 * 1024))
    assert out4.shape == (B4, 1)
    assert jnp.allclose(out4, ref_forward(x4, w4, b4), atol=1e-5, rtol=1e-5)

    print("KERNEL_OK")
</pallas_src>

<mosaic_0001>
module attributes {stable_mosaic.version = 11 : i64} {
  func.func @kernel(%arg0: i32, %arg1: i32, %arg2: memref<8x32xf32, #tpu.memory_space<vmem>>, %arg3: memref<1x32xf32, #tpu.memory_space<vmem>>, %arg4: memref<1xf32, #tpu.memory_space<smem>>, %arg5: memref<1x8xf32, #tpu.memory_space<vmem>>, %arg6: memref<1x8xf32, #tpu.memory_space<vmem>>) attributes {dimension_semantics = [#tpu.dimension_semantics<parallel>, #tpu.dimension_semantics<arbitrary>], iteration_bounds = array<i64: 1, 1>, scalar_prefetch = 0 : i64, scratch_operands = 1 : i64, tpu.core_type = #tpu.core_type<tc>, window_params = [{transform_indices = @transform_0, window_bounds = array<i64: 8, 32>}, {transform_indices = @transform_1, window_bounds = array<i64: 1, 32>}, {transform_indices = @transform_2, window_bounds = array<i64: 1>}, {transform_indices = @transform_3, window_bounds = array<i64: 1, 8>}]} {
    %c0_i32 = arith.constant 0 : i32
    %0 = arith.cmpi eq, %arg1, %c0_i32 : i32
    %1 = arith.extui %0 : i1 to i32
    %c0_i32_0 = arith.constant 0 : i32
    %2 = arith.cmpi ne, %1, %c0_i32_0 : i32
    scf.if %2 {
      %cst_10 = arith.constant 0.000000e+00 : f32
      %15 = vector.broadcast %cst_10 : f32 to vector<1x8xf32>
      %c0_11 = arith.constant 0 : index
      %c0_12 = arith.constant 0 : index
      %16 = vector.load %arg6[%c0_11, %c0_12] : memref<1x8xf32, #tpu.memory_space<vmem>>, vector<1x8xf32>
      tpu.vector_store %arg6[%c0_11, %c0_12], %15 {strides = array<i32>} : memref<1x8xf32, #tpu.memory_space<vmem>>, vector<1x8xf32>,
    } else {
    }
    %c0 = arith.constant 0 : index
    %c0_1 = arith.constant 0 : index
    %3 = vector.load %arg2[%c0, %c0_1] : memref<8x32xf32, #tpu.memory_space<vmem>>, vector<8x32xf32>
    %c0_2 = arith.constant 0 : index
    %c0_3 = arith.constant 0 : index
    %4 = vector.load %arg3[%c0_2, %c0_3] : memref<1x32xf32, #tpu.memory_space<vmem>>, vector<1x32xf32>
    %5 = vector.broadcast %4 : vector<1x32xf32> to vector<8x32xf32>
    %6 = arith.mulf %3, %5 : vector<8x32xf32>
    %c0_4 = arith.constant 0 : index
    %c0_5 = arith.constant 0 : index
    %7 = vector.load %arg6[%c0_4, %c0_5] : memref<1x8xf32, #tpu.memory_space<vmem>>, vector<1x8xf32>
    %cst = arith.constant dense<0.000000e+00> : vector<8xf32>
    %8 = vector.multi_reduction <add>, %6, %cst [1] : vector<8x32xf32> to vector<8xf32>
    %9 = vector.shape_cast %8 : vector<8xf32> to vector<1x8xf32>
    %10 = arith.addf %7, %9 : vector<1x8xf32>
    %c0_6 = arith.constant 0 : index
    %c0_7 = arith.constant 0 : index
    %11 = vector.load %arg6[%c0_6, %c0_7] : memref<1x8xf32, #tpu.memory_space<vmem>>, vector<1x8xf32>
    tpu.vector_store %arg6[%c0_6, %c0_7], %10 {strides = array<i32>} : memref<1x8xf32, #tpu.memory_space<vmem>>, vector<1x8xf32>,
    %c0_i32_8 = arith.constant 0 : i32
    %12 = arith.cmpi eq, %arg1, %c0_i32_8 : i32
    %13 = arith.extui %12 : i1 to i32
    %c0_i32_9 = arith.constant 0 : i32
    %14 = arith.cmpi ne, %13, %c0_i32_9 : i32
    scf.if %14 {
      %c0_10 = arith.constant 0 : index
      %c0_11 = arith.constant 0 : index
      %15 = vector.load %arg6[%c0_10, %c0_11] : memref<1x8xf32, #tpu.memory_space<vmem>>, vector<1x8xf32>
      %c0_12 = arith.constant 0 : index
      %16 = memref.load %arg4[%c0_12] : memref<1xf32, #tpu.memory_space<smem>>
      %17 = vector.broadcast %16 : f32 to vector<1x8xf32>
      %18 = arith.addf %15, %17 : vector<1x8xf32>
      %19 = arith.negf %18 : vector<1x8xf32>
      %20 = math.exp %19 : vector<1x8xf32>
      %cst_13 = arith.constant 1.000000e+00 : f32
      %21 = vector.broadcast %cst_13 : f32 to vector<1x8xf32>
      %22 = arith.addf %21, %20 : vector<1x8xf32>
      %23 = arith.divf %21, %22 : vector<1x8xf32>
      %c0_14 = arith.constant 0 : index
      %c0_15 = arith.constant 0 : index
      %24 = vector.load %arg5[%c0_14, %c0_15] : memref<1x8xf32, #tpu.memory_space<vmem>>, vector<1x8xf32>
      tpu.vector_store %arg5[%c0_14, %c0_15], %23 {strides = array<i32>} : memref<1x8xf32, #tpu.memory_space<vmem>>, vector<1x8xf32>,
    } else {
    }
    return
  }
  func.func @transform_0(%arg0: i32, %arg1: i32) -> (i32, i32) {
    %c0_i32 = arith.constant 0 : i32
    return %arg0, %arg1 : i32, i32
  }
  func.func @transform_1(%arg0: i32, %arg1: i32) -> (i32, i32) {
    %c0_i32 = arith.constant 0 : i32
    %c0_i32_0 = arith.constant 0 : i32
    return %c0_i32, %arg1 : i32, i32
  }
  func.func @transform_2(%arg0: i32, %arg1: i32) -> i32 {
    %c0_i32 = arith.constant 0 : i32
    %c0_i32_0 = arith.constant 0 : i32
    return %c0_i32 : i32
  }
  func.func @transform_3(%arg0: i32, %arg1: i32) -> (i32, i32) {
    %c0_i32 = arith.constant 0 : i32
    %c0_i32_0 = arith.constant 0 : i32
    return %c0_i32, %arg0 : i32, i32
  }
}

</mosaic_0001>

<bundles_post_ra>
// kernel: tpu_custom_call.1
= control target key start
LH: loop header
LB: loop body
LE: loop exit
PB: predicated region body
PF: predicated region fallthrough
CT: control target
= control target key end

     0   :  { %9 = vsyncpa [#allocation5], 0  ;;  %s304_s0 = inlined_call_operand.hbm [shape: f32[8,32], index: 0, kind: input, shape index: {}]   ;;  %s305_s1 = inlined_call_operand.vmem [shape: f32[1,32], index: 1, kind: input, shape index: {}]   ;;  %s306_s2 = inlined_call_operand.<no memory space> [shape: f32[1], index: 2, kind: input, shape index: {}]   ;;  %s307_s3 = inlined_call_operand.hbm [shape: f32[1,8], index: 3, kind: output, shape index: {}]  }
   0x1   :  { %10 = vsyncpa [#allocation6], 0  ;;  %s246_s12 = smov [#allocation4]   ;;  %s198_s16 = scalar_lea.hbm %s304_s0, 128 }
   0x2   :  { %s17_s13 = sshll.u32 %s246_s12, 4  ;;  %p199_p0 = scmp.ne.s32.totalorder %s304_s0, %s198_s16  ;;  %s18_s13 = int_to_ptr.vmem [resolvable:$true] %s17_s13 }
   0x3   :  { %p202_p1 = scmp.lt.u32.totalorder %s198_s16, %s304_s0 }
   0x5   :  { %p204_p2 = pnand %p202_p1, %p199_p0 }
   0x7   :  { %207 = shalt.err (!%p204_p2)
}
   0x8   :  { %s208_s21 = scalar_lea.vmem %s18_s13, 128  ;;  %p213_p4 = scmp.lt.s32.totalorder %s18_s13, %s18_s13 }
   0x9   :  { %p209_p3 = scmp.ne.s32.totalorder %s18_s13, %s208_s21  ;;  %p214_p5 = scmp.lt.s32.totalorder %s208_s21, %s208_s21 }
   0xb   :  { %p215_p6 = por %p214_p5, %p213_p4 }
   0xd   :  { %p216_p7 = pnand %p215_p6, %p209_p3 }
   0xf   :  { %219 = shalt.err (!%p216_p7)
}
  0x10   :  { %20 = dma.hbm_to_vmem [thread:$0]  %s304_s0, 128, %s18_s13, [#allocation5]  }
  0x11   :  { %242 = dma.done.wait [#allocation5], 128  }
  0x12   :  { %243 = vsyncadd [#allocation5], 4294967168  ;;  %v34_v0 = vld [vmem:[#allocation4] sm:$0xff]  ;;  %v186_v1 = vld [vmem:[%s305_s1] ss:$0 sm:$0xff]  ;;  %vm44_vm0 = vcmask 261120   ;;  %v49_v5 = vlaneseq  ;;  %v162_v50 = vstv %s306_s2 }
  0x13   :  { %v42_v2 = vmul.f32 %v186_v1, %v34_v0  ;;  %v247_v4 = vmov 0   ;;  %v248_v9 = vmov 1966171168   ;;  %vm32_vm1 = vcmask 57344   ;;  %s250_s26 = smov [#allocation7]  }
  0x14   :  { %193 = vset.pattern.permute.xlu0 %v247_v4  ;;  %v50_v6 = vshrl.u32 %v49_v5, 7  ;;  %v134_v7 = vand.u32 127, %v49_v5  ;;  %v86_v10 = vunpack.c.l.s4 %v248_v9  ;;  %v249_v43 = vmov 0.0   ;;  %s177_s27 = sshll.u32 %s250_s26, 4  ;;  %s178_s27 = int_to_ptr.vmem [resolvable:$true] %s177_s27 }
  0x15   :  { %v45_v3 = vsel %vm44_vm0, %v42_v2, 0.0  ;;  %33 = vst.msk [vmem:[#allocation2] sm:$0x1] %vm32_vm1, %v249_v43  ;;  %s220_s28 = scalar_lea.vmem %s178_s27, 16  ;;  %s224_s29 = scalar_lea.vmem %s178_s27, 32 }
  0x16   :  { %46 = vadd.xlane.f32.xlu0 %v45_v3  ;;  %v137_v8 = vsub.s32 %v134_v7, %v50_v6  ;;  %v87_v11 = vunpack.c.0.s8 %v86_v10  ;;  %v51_v12 = vsub.s32 0, %v50_v6  ;;  %v55_v13 = vsub.s32 1, %v50_v6  ;;  %p221_p8 = scmp.ne.s32.totalorder %s178_s27, %s220_s28  ;;  %p225_p9 = scmp.lt.s32.totalorder %s178_s27, %s178_s27 }
  0x17   :  { %v59_v14 = vsub.s32 2, %v50_v6  ;;  %v63_v15 = vsub.s32 3, %v50_v6  ;;  %v67_v16 = vsub.s32 4, %v50_v6  ;;  %v71_v17 = vsub.s32 5, %v50_v6  ;;  %p226_p10 = scmp.lt.s32.totalorder %s224_s29, %s220_s28 }
  0x18   :  { %v75_v18 = vsub.s32 6, %v50_v6  ;;  %v79_v19 = vsub.s32 7, %v50_v6  ;;  %v90_v21 = vsub.s32 %v87_v11, %v50_v6 }
  0x19   :  { %p227_p11 = por %p226_p10, %p225_p9 }
  0x1b   :  { %p228_p12 = pnand %p227_p11, %p221_p8 }
  0x1c   :  { %v43_v47 = vld [vmem:[#allocation2] sm:$0x1] }
  0xa3   :  { %v47_v20 = vpop.xlane.xlu0 %46 }
  0xa4   :  { %v52_v22 = vrot.slane %v47_v20, %v51_v12  ;;  %v56_v23 = vrot.slane %v47_v20, %v55_v13  ;;  %v60_v24 = vrot.slane %v47_v20, %v59_v14  ;;  %v64_v25 = vrot.slane %v47_v20, %v63_v15 }
  0xa5   :  { %v68_v26 = vrot.slane %v47_v20, %v67_v16  ;;  %v72_v27 = vrot.slane %v47_v20, %v71_v17  ;;  %v76_v28 = vrot.slane %v47_v20, %v75_v18  ;;  %v80_v29 = vrot.slane %v47_v20, %v79_v19 }
  0xa6   :  { %v81_v30 = vcombine.low %v52_v22, %v56_v23  ;;  %v82_v31 = vcombine.low %v60_v24, %v64_v25 }
  0xa7   :  { %v83_v32 = vcombine.low %v68_v26, %v72_v27  ;;  %v84_v33 = vcombine.low %v76_v28, %v80_v29 }
  0xa8   :  { %v91_v34 = vrot.slane %v81_v30, %v90_v21  ;;  %v98_v35 = vrot.slane %v82_v31, %v90_v21 }
  0xa9   :  { %v105_v36 = vrot.slane %v83_v32, %v90_v21  ;;  %v112_v37 = vrot.slane %v84_v33, %v90_v21 }
  0xaa   :  { %v113_v38 = vcombine.low %v91_v34, %v98_v35 }
  0xab   :  { %v114_v39 = vcombine.low %v105_v36, %v112_v37 }
  0xac   :  { %v121_v40 = vrot.slane %v113_v38, %v90_v21 }
  0xad   :  { %v128_v41 = vrot.slane %v114_v39, %v90_v21 }
  0xaf   :  { %v129_v42 = vcombine.low %v121_v40, %v128_v41 }
  0xb1   :  { %131 = vperm.xlu0 %193, %v129_v42  }
 0x130   :  { %v132_v44 = vpop.permute.xlu0 %131 }
 0x131   :  { %v138_v45 = vrot.slane %v132_v44, %v137_v8 }
 0x133   :  { %v145_v46 = vrot.slane %v138_v45, %v90_v21 }
 0x135   :  { %v152_v48 = vrot.slane %v145_v46, %v90_v21 }
 0x137   :  { %v154_v49 = vadd.f32 %v152_v48, %v43_v47 }
 0x139   :  { %156 = vst.msk [vmem:[#allocation2] sm:$0x1] %vm32_vm1, %v154_v49 }
 0x140   :  { %v160_v51 = vld [vmem:[#allocation2] sm:$0x1] }
 0x141   :  { %v163_v52 = vadd.f32 %v162_v50, %v160_v51 }
 0x143   :  { %v187_v53 = vmul.f32 -1.442695, %v163_v52 }
 0x145   :  { %194 = vpow2.f32 %v187_v53 }
 0x14f   :  { %v195_v54 = vpop.eup %194 }
 0x150   :  { %v167_v55 = vadd.f32 1.0, %v195_v54 }
 0x152   :  { %196 = vrcp.f32 %v167_v55 }
 0x15c   :  { %v197_v56 = vpop.eup %196 }
 0x15d   :  { %170 = vst.msk [vmem:[#allocation7] sm:$0x1] %vm32_vm1, %v197_v56 }
 0x15e   :  { %231 = shalt.err (!%p228_p12)
}
 0x15f   :  { %s232_s4 = scalar_lea.hbm %s307_s3, 16 }
 0x160   :  { %p233_p13 = scmp.ne.s32.totalorder %s307_s3, %s232_s4  ;;  %p236_p0 = scmp.lt.u32.totalorder %s232_s4, %s307_s3 }
 0x162   :  { %p238_p1 = pnand %p236_p0, %p233_p13 }
 0x164   :  { %241 = shalt.err (!%p238_p1)
}
 0x165   :  { %180 = dma.vmem_to_hbm [thread:$0]  %s178_s27, 16, %s307_s3, [#allocation6]  }
 0x166   :  { %244 = dma.done.wait [#allocation6], 16  }
 0x167   :  { %245 = vsyncadd [#allocation6], 4294967280 }
 0x168   :  { %184 = vsyncpa [#allocation5], 1 }
 0x169   :  { %185 = vsyncpa [#allocation6], 1 }

</bundles_post_ra>
